<compile_context>
chip_gen: v5e
topology: v5e:2x2
jax: 0.10.0
libtpu: 0.0.40
codegen_flags: <defaults>
</compile_context>

<pallas_src>
import functools
import math

import jax
import jax.numpy as jnp
import numpy as np
from jax.experimental import pallas as pl
from jax.experimental.pallas import tpu as pltpu

LANE = 128


# ----------------------------------------------------------------------------
# Small helpers
# ----------------------------------------------------------------------------
def _round_up(x, m):
    return ((x + m - 1) // m) * m


def _pad2(a, rows, cols):
    r, c = a.shape
    return jnp.pad(a, ((0, rows - r), (0, cols - c)))


# ----------------------------------------------------------------------------
# Pallas kernel: fused MLP (hidden ReLU layers + fused mean/chol head)
# ----------------------------------------------------------------------------
def _gaussian_nn2_kernel(x_ref, *refs, num_layers):
    # refs = [w1, b1, ..., wL, bL, w_head, b_head, out_ref]
    n_param = 2 * (num_layers + 1)
    params = refs[:n_param]
    out_ref = refs[n_param]

    h = x_ref[...]  # f32 (tile_b, in_size)
    for i in range(num_layers):  # static Python unroll (num_layers is compile-time)
        w = params[2 * i][...]          # bf16 (d_in, d_out_p)
        b = params[2 * i + 1][...]      # f32  (1, d_out_p)
        acc = jnp.dot(h.astype(jnp.bfloat16), w, preferred_element_type=jnp.float32)
        h = jnp.maximum(acc + b, 0.0)   # bias-add / ReLU in f32 (v5e has no bf16 VALU)

    w_head = params[2 * num_layers][...]
    b_head = params[2 * num_layers + 1][...]
    out = jnp.dot(h.astype(jnp.bfloat16), w_head,
                  preferred_element_type=jnp.float32) + b_head
    out_ref[...] = out.astype(out_ref.dtype)  # bf16 lane-dense writeback


# ----------------------------------------------------------------------------
# One-time parameter preparation (hoisted out of the per-forward hot path)
# ----------------------------------------------------------------------------
def prepare_params(layer_params, head_params):
    """Pads feature dims to 128 lanes, fuses the mean/chol heads, casts weights to bf16.

    layer_params: list of (W_i (d_in, d_out), b_i (1, d_out)) for the ReLU stack
    head_params:  (W_mean, b_mean, W_chol, b_chol), same (in, out) layout
    Returns (prepared_params_tuple, meta_dict).
    """
    w_mean, b_mean, w_chol, b_chol = head_params
    mean_out = int(w_mean.shape[1])
    chol_out = int(w_chol.shape[1])
    w_head = jnp.concatenate([w_mean, w_chol], axis=1)
    b_head = jnp.concatenate([b_mean, b_chol], axis=1)

    in_size = int(layer_params[0][0].shape[0])
    prepared = []
    prev = in_size  # first weight keeps its natural input width (x is NOT padded)
    for (w, b) in layer_params:
        d_out_p = _round_up(int(w.shape[1]), LANE)
        prepared.append(_pad2(w.astype(jnp.float32), prev, d_out_p).astype(jnp.bfloat16))
        prepared.append(_pad2(b.astype(jnp.float32), 1, d_out_p))
        prev = d_out_p
    head_out_p = _round_up(mean_out + chol_out, LANE)
    prepared.append(_pad2(w_head.astype(jnp.float32), prev, head_out_p).astype(jnp.bfloat16))
    prepared.append(_pad2(b_head.astype(jnp.float32), 1, head_out_p))

    meta = dict(in_size=in_size, num_layers=len(layer_params),
                mean_out=mean_out, chol_out=chol_out, head_out_p=head_out_p)
    return tuple(prepared), meta


# ----------------------------------------------------------------------------
# Tiling / VMEM sizing
# ----------------------------------------------------------------------------
def _choose_tiling(B):
    if B < 512:
        # Single grid step: per-step overhead dominates tiny per-core tiles, so do not
        # split for megacore; just round rows up to the 8-sublane requirement.
        tile_b = _round_up(max(B, 8), 8)
        return tile_b, tile_b
    # Large batch: up to 512-row tiles (near HBM roofline), and at least 2 grid steps
    # so both v7x TensorCores get work via dimension_semantics=("parallel",).
    tile_b = min(512, _round_up((B + 1) // 2, 8))
    return tile_b, _round_up(B, tile_b)


def _vmem_limit_bytes(required_bytes):
    try:
        cap = int(pltpu.get_tpu_info().vmem_capacity_bytes)
    except Exception:
        cap = 64 * 1024 * 1024  # conservative fallback (v7x-sized)
    gen_cap = (cap * 3) // 4    # ~48 MiB on v7x, ~96 MiB on v5e/v6e: leave headroom
    return int(min(gen_cap, max(32 * 1024 * 1024, required_bytes)))


def _const_block_specs(params, single_buffer):
    specs = []
    for p in params:
        kwargs = {}
        if single_buffer:
            # Constant-index resident blocks don't need double buffering.
            kwargs["pipeline_mode"] = pl.Buffered(1)
        specs.append(pl.BlockSpec(tuple(p.shape), lambda i: (0, 0), **kwargs))
    return specs


# ----------------------------------------------------------------------------
# Wrapper: pallas_call
# ----------------------------------------------------------------------------
def gaussian_nn2_mlp(x, prepared_params, meta, *, tile_b=None):
    """Runs the fused MLP Pallas kernel. Returns (flat_means, flat_chols) in f32."""
    B, in_size = x.shape
    assert in_size == meta["in_size"]
    num_layers = meta["num_layers"]
    head_out_p = meta["head_out_p"]
    mean_out, chol_out = meta["mean_out"], meta["chol_out"]

    if tile_b is None:
        tile_b, B_pad = _choose_tiling(B)
    else:
        tile_b = _round_up(tile_b, 8)
        B_pad = _round_up(B, tile_b)

    x_p = x.astype(jnp.float32)
    if B_pad != B:
        x_p = jnp.pad(x_p, ((0, B_pad - B), (0, 0)))  # rows only; feature dim unpadded

    grid = (B_pad // tile_b,)
    x_spec = pl.BlockSpec((tile_b, in_size), lambda i: (i, 0))
    out_spec = pl.BlockSpec((tile_b, head_out_p), lambda i: (i, 0))
    out_shape = jax.ShapeDtypeStruct((B_pad, head_out_p), jnp.bfloat16)

    # Advisory cost estimate so XLA schedules the tiny custom call sensibly.
    mm_dims = [(int(prepared_params[2 * i].shape[0]), int(prepared_params[2 * i].shape[1]))
               for i in range(num_layers + 1)]
    flops = 2 * B_pad * sum(k * n for k, n in mm_dims)
    weight_bytes = sum(int(p.size) * p.dtype.itemsize for p in prepared_params)
    bytes_accessed = 4 * B_pad * in_size + weight_bytes + 2 * B_pad * head_out_p

    max_width = max(n for _, n in mm_dims)
    required_vmem = (2 * weight_bytes                   # worst case (double-buffered) weights
                     + 2 * 4 * tile_b * in_size         # double-buffered f32 x tiles
                     + 2 * 2 * tile_b * head_out_p      # double-buffered bf16 out tiles
                     + 4 * 4 * tile_b * max_width       # live activation copies
                     + (8 << 20))                       # Mosaic internal scratch headroom
    compiler_params = pltpu.CompilerParams(
        dimension_semantics=("parallel",),
        vmem_limit_bytes=_vmem_limit_bytes(required_vmem),
    )
    cost = pl.CostEstimate(flops=flops, transcendentals=0, bytes_accessed=bytes_accessed)

    kernel = functools.partial(_gaussian_nn2_kernel, num_layers=num_layers)

    def _call(single_buffer_weights):
        return pl.pallas_call(
            kernel,
            out_shape=out_shape,
            grid=grid,
            in_specs=[x_spec] + _const_block_specs(prepared_params, single_buffer_weights),
            out_specs=out_spec,
            compiler_params=compiler_params,
            cost_estimate=cost,
        )(x_p, *prepared_params)

    try:
        head = _call(single_buffer_weights=hasattr(pl, "Buffered"))
    except Exception:
        # Older Pallas without pipeline_mode support: fall back to default buffering.
        head = _call(single_buffer_weights=False)

    flat_means = head[:B, :mean_out].astype(jnp.float32)
    flat_chols = head[:B, mean_out:mean_out + chol_out].astype(jnp.float32)
    return flat_means, flat_chols


# ----------------------------------------------------------------------------
# Plain-JAX glue: fill_triangular_gmm (TFP-style fill_triangular + softplus diag)
# ----------------------------------------------------------------------------
# TODO(synk): fill_triangular_gmm is not shown in the provided source; this follows the
# standard TRPL/GMM-toy implementation (TFP fill_triangular packing, softplus diagonal
# shifted so the initial std equals init_std, minimal_std=1e-3).
def _softplus(x):
    return jnp.logaddexp(x, 0.0)


def _inverse_softplus(x):
    return jnp.log(jnp.expm1(x))


def fill_triangular(x):
    # x: (..., m) with m = n(n+1)/2  ->  (..., n, n) lower triangular (TFP ordering)
    m = x.shape[-1]
    n = int(round((math.sqrt(8 * m + 1) - 1) / 2))
    x_tail = x[..., n:]
    xc = jnp.concatenate([x_tail, jnp.flip(x, axis=-1)], axis=-1)
    y = xc.reshape(x.shape[:-1] + (n, n))
    return jnp.tril(y)


def fill_triangular_gmm(flat_chols, init_std=1.0, minimal_std=1e-3):
    chols = fill_triangular(flat_chols)
    diag = jnp.diagonal(chols, axis1=-2, axis2=-1)
    # Guard against init_std <= minimal_std producing -inf in inverse_softplus.
    shift = _inverse_softplus(jnp.maximum(jnp.asarray(init_std, jnp.float32) - minimal_std,
                                          1e-6))
    new_diag = _softplus(diag + shift) + minimal_std
    n = chols.shape[-1]
    eye = jnp.eye(n, dtype=chols.dtype)
    return jnp.tril(chols, -1) + new_diag[..., None] * eye


# ----------------------------------------------------------------------------
# Full GaussianNN2 forward
# ----------------------------------------------------------------------------
def gaussian_nn2_forward(x, prepared_params, meta, *, n_components, mean_dim,
                         init_std=1.0, tile_b=None):
    flat_means, flat_chols = gaussian_nn2_mlp(x, prepared_params, meta, tile_b=tile_b)
    means = flat_means.reshape(-1, n_components, mean_dim)
    chols_flat = flat_chols.reshape(-1, n_components, mean_dim * (mean_dim + 1) // 2)
    chols = fill_triangular_gmm(chols_flat, init_std)
    return means, chols


# ----------------------------------------------------------------------------
# Deterministic parameter init (PyTorch-Linear-style uniform(-1/sqrt(fan_in), ...))
# ----------------------------------------------------------------------------
def init_params(key, in_size, num_layers, hidden, n_components, dim):
    chol_dim = dim * (dim + 1) // 2
    sizes = [(in_size, hidden)] + [(hidden, hidden)] * (num_layers - 1)
    layer_params = []
    for (fi, fo) in sizes:
        key, k1, k2 = jax.random.split(key, 3)
        bound = 1.0 / math.sqrt(fi)
        w = jax.random.uniform(k1, (fi, fo), jnp.float32, -bound, bound)
        b = jax.random.uniform(k2, (1, fo), jnp.float32, -bound, bound)
        layer_params.append((w, b))
    heads = []
    for fo in (n_components * dim, n_components * chol_dim):
        key, k1, k2 = jax.random.split(key, 3)
        bound = 1.0 / math.sqrt(hidden)
        heads.append(jax.random.uniform(k1, (hidden, fo), jnp.float32, -bound, bound))
        heads.append(jax.random.uniform(k2, (1, fo), jnp.float32, -bound, bound))
    return layer_params, tuple(heads)


# ----------------------------------------------------------------------------
# Pure-JAX f32 reference for correctness
# ----------------------------------------------------------------------------
def _reference_forward(x, layer_params, head_params, n_components, mean_dim):
    h = x
    for w, b in layer_params:
        h = jnp.maximum(h @ w + b, 0.0)
    w_mean, b_mean, w_chol, b_chol = head_params
    flat_means = h @ w_mean + b_mean
    flat_chols = h @ w_chol + b_chol
    means = flat_means.reshape(-1, n_components, mean_dim)
    chols = fill_triangular_gmm(
        flat_chols.reshape(-1, n_components, mean_dim * (mean_dim + 1) // 2), 1.0)
    return means, chols


if __name__ == "__main__":
    # Small shapes consistent with the module: in_size=16, 3 hidden layers of 32 units,
    # 4 mixture components in dim=2 (=> mean_dim=2, chol_dim=3), batch=16.
    in_size, num_layers, hidden = 16, 3, 32
    n_components, dim = 4, 2
    batch = 16

    key = jax.random.PRNGKey(0)
    key, kx = jax.random.split(key)
    x = jax.random.normal(kx, (batch, in_size), jnp.float32)
    layer_params, head_params = init_params(key, in_size, num_layers, hidden,
                                            n_components, dim)

    # One-time parameter preparation (pad + fuse heads + bf16 cast), outside the hot path.
    prepared_params, meta = prepare_params(layer_params, head_params)

    means, chols = gaussian_nn2_forward(
        x, prepared_params, meta,
        n_components=n_components, mean_dim=dim, init_std=1.0)
    jax.block_until_ready((means, chols))

    # Sanity check against the pure-JAX f32 reference (bf16 MXU path => looser tolerance).
    ref_means, ref_chols = _reference_forward(x, layer_params, head_params,
                                              n_components, dim)
    assert means.shape == (batch, n_components, dim)
    assert chols.shape == (batch, n_components, dim, dim)
    np.testing.assert_allclose(np.asarray(means), np.asarray(ref_means),
                               rtol=3e-2, atol=3e-2)
    np.testing.assert_allclose(np.asarray(chols), np.asarray(ref_chols),
                               rtol=3e-2, atol=3e-2)

    print("KERNEL_OK")
</pallas_src>

<mosaic_0001>
module attributes {stable_mosaic.version = 11 : i64} {
  func.func @_gaussian_nn2_kernel(%arg0: i32, %arg1: memref<16x16xf32, #tpu.memory_space<vmem>>, %arg2: memref<16x128xbf16, #tpu.memory_space<vmem>>, %arg3: memref<1x128xf32, #tpu.memory_space<vmem>>, %arg4: memref<128x128xbf16, #tpu.memory_space<vmem>>, %arg5: memref<1x128xf32, #tpu.memory_space<vmem>>, %arg6: memref<128x128xbf16, #tpu.memory_space<vmem>>, %arg7: memref<1x128xf32, #tpu.memory_space<vmem>>, %arg8: memref<128x128xbf16, #tpu.memory_space<vmem>>, %arg9: memref<1x128xf32, #tpu.memory_space<vmem>>, %arg10: memref<16x128xbf16, #tpu.memory_space<vmem>>) attributes {dimension_semantics = [#tpu.dimension_semantics<parallel>], iteration_bounds = array<i64: 1>, scalar_prefetch = 0 : i64, scratch_operands = 0 : i64, tpu.core_type = #tpu.core_type<tc>, window_params = [{transform_indices = @transform_0, window_bounds = array<i64: 16, 16>}, {pipeline_mode = #tpu.pipeline_mode<synchronous>, transform_indices = @transform_1, window_bounds = array<i64: 16, 128>}, {pipeline_mode = #tpu.pipeline_mode<synchronous>, transform_indices = @transform_2, window_bounds = array<i64: 1, 128>}, {pipeline_mode = #tpu.pipeline_mode<synchronous>, transform_indices = @transform_3, window_bounds = array<i64: 128, 128>}, {pipeline_mode = #tpu.pipeline_mode<synchronous>, transform_indices = @transform_4, window_bounds = array<i64: 1, 128>}, {pipeline_mode = #tpu.pipeline_mode<synchronous>, transform_indices = @transform_5, window_bounds = array<i64: 128, 128>}, {pipeline_mode = #tpu.pipeline_mode<synchronous>, transform_indices = @transform_6, window_bounds = array<i64: 1, 128>}, {pipeline_mode = #tpu.pipeline_mode<synchronous>, transform_indices = @transform_7, window_bounds = array<i64: 128, 128>}, {pipeline_mode = #tpu.pipeline_mode<synchronous>, transform_indices = @transform_8, window_bounds = array<i64: 1, 128>}, {transform_indices = @transform_9, window_bounds = array<i64: 16, 128>}]} {
    %c0 = arith.constant 0 : index
    %c0_0 = arith.constant 0 : index
    %0 = vector.load %arg1[%c0, %c0_0] : memref<16x16xf32, #tpu.memory_space<vmem>>, vector<16x16xf32>
    %c0_1 = arith.constant 0 : index
    %c0_2 = arith.constant 0 : index
    %1 = vector.load %arg2[%c0_1, %c0_2] : memref<16x128xbf16, #tpu.memory_space<vmem>>, vector<16x128xbf16>
    %c0_3 = arith.constant 0 : index
    %c0_4 = arith.constant 0 : index
    %2 = vector.load %arg3[%c0_3, %c0_4] : memref<1x128xf32, #tpu.memory_space<vmem>>, vector<1x128xf32>
    %3 = arith.truncf %0 : vector<16x16xf32> to vector<16x16xbf16>
    %cst = arith.constant dense<0.000000e+00> : vector<16x128xf32>
    %4 = tpu.matmul %3, %1, %cst {dimension_numbers = #tpu.dot_dimension_numbers<[1], [0], [0], [1], [0, 0, 1, 1], [], []>} : vector<16x16xbf16>, vector<16x128xbf16>, vector<16x128xf32> -> vector<16x128xf32>
    %5 = vector.broadcast %2 : vector<1x128xf32> to vector<16x128xf32>
    %6 = arith.addf %4, %5 : vector<16x128xf32>
    %cst_5 = arith.constant 0.000000e+00 : f32
    %7 = vector.broadcast %cst_5 : f32 to vector<16x128xf32>
    %8 = arith.maximumf %6, %7 : vector<16x128xf32>
    %c0_6 = arith.constant 0 : index
    %c0_7 = arith.constant 0 : index
    %9 = vector.load %arg4[%c0_6, %c0_7] : memref<128x128xbf16, #tpu.memory_space<vmem>>, vector<128x128xbf16>
    %c0_8 = arith.constant 0 : index
    %c0_9 = arith.constant 0 : index
    %10 = vector.load %arg5[%c0_8, %c0_9] : memref<1x128xf32, #tpu.memory_space<vmem>>, vector<1x128xf32>
    %11 = arith.truncf %8 : vector<16x128xf32> to vector<16x128xbf16>
    %cst_10 = arith.constant dense<0.000000e+00> : vector<16x128xf32>
    %12 = tpu.matmul %11, %9, %cst_10 {dimension_numbers = #tpu.dot_dimension_numbers<[1], [0], [0], [1], [0, 0, 1, 1], [], []>} : vector<16x128xbf16>, vector<128x128xbf16>, vector<16x128xf32> -> vector<16x128xf32>
    %13 = vector.broadcast %10 : vector<1x128xf32> to vector<16x128xf32>
    %14 = arith.addf %12, %13 : vector<16x128xf32>
    %cst_11 = arith.constant 0.000000e+00 : f32
    %15 = vector.broadcast %cst_11 : f32 to vector<16x128xf32>
    %16 = arith.maximumf %14, %15 : vector<16x128xf32>
    %c0_12 = arith.constant 0 : index
    %c0_13 = arith.constant 0 : index
    %17 = vector.load %arg6[%c0_12, %c0_13] : memref<128x128xbf16, #tpu.memory_space<vmem>>, vector<128x128xbf16>
    %c0_14 = arith.constant 0 : index
    %c0_15 = arith.constant 0 : index
    %18 = vector.load %arg7[%c0_14, %c0_15] : memref<1x128xf32, #tpu.memory_space<vmem>>, vector<1x128xf32>
    %19 = arith.truncf %16 : vector<16x128xf32> to vector<16x128xbf16>
    %cst_16 = arith.constant dense<0.000000e+00> : vector<16x128xf32>
    %20 = tpu.matmul %19, %17, %cst_16 {dimension_numbers = #tpu.dot_dimension_numbers<[1], [0], [0], [1], [0, 0, 1, 1], [], []>} : vector<16x128xbf16>, vector<128x128xbf16>, vector<16x128xf32> -> vector<16x128xf32>
    %21 = vector.broadcast %18 : vector<1x128xf32> to vector<16x128xf32>
    %22 = arith.addf %20, %21 : vector<16x128xf32>
    %cst_17 = arith.constant 0.000000e+00 : f32
    %23 = vector.broadcast %cst_17 : f32 to vector<16x128xf32>
    %24 = arith.maximumf %22, %23 : vector<16x128xf32>
    %c0_18 = arith.constant 0 : index
    %c0_19 = arith.constant 0 : index
    %25 = vector.load %arg8[%c0_18, %c0_19] : memref<128x128xbf16, #tpu.memory_space<vmem>>, vector<128x128xbf16>
    %c0_20 = arith.constant 0 : index
    %c0_21 = arith.constant 0 : index
    %26 = vector.load %arg9[%c0_20, %c0_21] : memref<1x128xf32, #tpu.memory_space<vmem>>, vector<1x128xf32>
    %27 = arith.truncf %24 : vector<16x128xf32> to vector<16x128xbf16>
    %cst_22 = arith.constant dense<0.000000e+00> : vector<16x128xf32>
    %28 = tpu.matmul %27, %25, %cst_22 {dimension_numbers = #tpu.dot_dimension_numbers<[1], [0], [0], [1], [0, 0, 1, 1], [], []>} : vector<16x128xbf16>, vector<128x128xbf16>, vector<16x128xf32> -> vector<16x128xf32>
    %29 = vector.broadcast %26 : vector<1x128xf32> to vector<16x128xf32>
    %30 = arith.addf %28, %29 : vector<16x128xf32>
    %31 = arith.truncf %30 : vector<16x128xf32> to vector<16x128xbf16>
    %c0_23 = arith.constant 0 : index
    %c0_24 = arith.constant 0 : index
    %32 = vector.load %arg10[%c0_23, %c0_24] : memref<16x128xbf16, #tpu.memory_space<vmem>>, vector<16x128xbf16>
    tpu.vector_store %arg10[%c0_23, %c0_24], %31 {strides = array<i32>} : memref<16x128xbf16, #tpu.memory_space<vmem>>, vector<16x128xbf16>,
    return
  }
  func.func @transform_0(%arg0: i32) -> (i32, i32) {
    %c0_i32 = arith.constant 0 : i32
    %c0_i32_0 = arith.constant 0 : i32
    return %arg0, %c0_i32 : i32, i32
  }
  func.func @transform_1(%arg0: i32) -> (i32, i32) {
    %c0_i32 = arith.constant 0 : i32
    %c0_i32_0 = arith.constant 0 : i32
    %c0_i32_1 = arith.constant 0 : i32
    return %c0_i32, %c0_i32_0 : i32, i32
  }
  func.func @transform_2(%arg0: i32) -> (i32, i32) {
    %c0_i32 = arith.constant 0 : i32
    %c0_i32_0 = arith.constant 0 : i32
    %c0_i32_1 = arith.constant 0 : i32
    return %c0_i32, %c0_i32_0 : i32, i32
  }
  func.func @transform_3(%arg0: i32) -> (i32, i32) {
    %c0_i32 = arith.constant 0 : i32
    %c0_i32_0 = arith.constant 0 : i32
    %c0_i32_1 = arith.constant 0 : i32
    return %c0_i32, %c0_i32_0 : i32, i32
  }
  func.func @transform_4(%arg0: i32) -> (i32, i32) {
    %c0_i32 = arith.constant 0 : i32
    %c0_i32_0 = arith.constant 0 : i32
    %c0_i32_1 = arith.constant 0 : i32
    return %c0_i32, %c0_i32_0 : i32, i32
  }
  func.func @transform_5(%arg0: i32) -> (i32, i32) {
    %c0_i32 = arith.constant 0 : i32
    %c0_i32_0 = arith.constant 0 : i32
    %c0_i32_1 = arith.constant 0 : i32
    return %c0_i32, %c0_i32_0 : i32, i32
  }
  func.func @transform_6(%arg0: i32) -> (i32, i32) {
    %c0_i32 = arith.constant 0 : i32
    %c0_i32_0 = arith.constant 0 : i32
    %c0_i32_1 = arith.constant 0 : i32
    return %c0_i32, %c0_i32_0 : i32, i32
  }
  func.func @transform_7(%arg0: i32) -> (i32, i32) {
    %c0_i32 = arith.constant 0 : i32
    %c0_i32_0 = arith.constant 0 : i32
    %c0_i32_1 = arith.constant 0 : i32
    return %c0_i32, %c0_i32_0 : i32, i32
  }
  func.func @transform_8(%arg0: i32) -> (i32, i32) {
    %c0_i32 = arith.constant 0 : i32
    %c0_i32_0 = arith.constant 0 : i32
    %c0_i32_1 = arith.constant 0 : i32
    return %c0_i32, %c0_i32_0 : i32, i32
  }
  func.func @transform_9(%arg0: i32) -> (i32, i32) {
    %c0_i32 = arith.constant 0 : i32
    %c0_i32_0 = arith.constant 0 : i32
    return %arg0, %c0_i32 : i32, i32
  }
}

module attributes {stable_mosaic.version = 11 : i64} {
  func.func @_gaussian_nn2_kernel(%arg0: i32, %arg1: memref<16x16xf32, #tpu.memory_space<vmem>>, %arg2: memref<16x128xbf16, #tpu.memory_space<vmem>>, %arg3: memref<1x128xf32, #tpu.memory_space<vmem>>, %arg4: memref<128x128xbf16, #tpu.memory_space<vmem>>, %arg5: memref<1x128xf32, #tpu.memory_space<vmem>>, %arg6: memref<128x128xbf16, #tpu.memory_space<vmem>>, %arg7: memref<1x128xf32, #tpu.memory_space<vmem>>, %arg8: memref<128x128xbf16, #tpu.memory_space<vmem>>, %arg9: memref<1x128xf32, #tpu.memory_space<vmem>>, %arg10: memref<16x128xbf16, #tpu.memory_space<vmem>>) attributes {dimension_semantics = [#tpu.dimension_semantics<parallel>], iteration_bounds = array<i64: 1>, scalar_prefetch = 0 : i64, scratch_operands = 0 : i64, tpu.core_type = #tpu.core_type<tc>, window_params = [{transform_indices = @transform_0, window_bounds = array<i64: 16, 16>}, {pipeline_mode = #tpu.pipeline_mode<synchronous>, transform_indices = @transform_1, window_bounds = array<i64: 16, 128>}, {pipeline_mode = #tpu.pipeline_mode<synchronous>, transform_indices = @transform_2, window_bounds = array<i64: 1, 128>}, {pipeline_mode = #tpu.pipeline_mode<synchronous>, transform_indices = @transform_3, window_bounds = array<i64: 128, 128>}, {pipeline_mode = #tpu.pipeline_mode<synchronous>, transform_indices = @transform_4, window_bounds = array<i64: 1, 128>}, {pipeline_mode = #tpu.pipeline_mode<synchronous>, transform_indices = @transform_5, window_bounds = array<i64: 128, 128>}, {pipeline_mode = #tpu.pipeline_mode<synchronous>, transform_indices = @transform_6, window_bounds = array<i64: 1, 128>}, {pipeline_mode = #tpu.pipeline_mode<synchronous>, transform_indices = @transform_7, window_bounds = array<i64: 128, 128>}, {pipeline_mode = #tpu.pipeline_mode<synchronous>, transform_indices = @transform_8, window_bounds = array<i64: 1, 128>}, {transform_indices = @transform_9, window_bounds = array<i64: 16, 128>}]} {
    %c0 = arith.constant 0 : index
    %c0_0 = arith.constant 0 : index
    %0 = vector.load %arg1[%c0, %c0_0] : memref<16x16xf32, #tpu.memory_space<vmem>>, vector<16x16xf32>
    %c0_1 = arith.constant 0 : index
    %c0_2 = arith.constant 0 : index
    %1 = vector.load %arg2[%c0_1, %c0_2] : memref<16x128xbf16, #tpu.memory_space<vmem>>, vector<16x128xbf16>
    %c0_3 = arith.constant 0 : index
    %c0_4 = arith.constant 0 : index
    %2 = vector.load %arg3[%c0_3, %c0_4] : memref<1x128xf32, #tpu.memory_space<vmem>>, vector<1x128xf32>
    %3 = arith.truncf %0 : vector<16x16xf32> to vector<16x16xbf16>
    %cst = arith.constant dense<0.000000e+00> : vector<16x128xf32>
    %4 = tpu.matmul %3, %1, %cst {dimension_numbers = #tpu.dot_dimension_numbers<[1], [0], [0], [1], [0, 0, 1, 1], [], []>} : vector<16x16xbf16>, vector<16x128xbf16>, vector<16x128xf32> -> vector<16x128xf32>
    %5 = vector.broadcast %2 : vector<1x128xf32> to vector<16x128xf32>
    %6 = arith.addf %4, %5 : vector<16x128xf32>
    %cst_5 = arith.constant 0.000000e+00 : f32
    %7 = vector.broadcast %cst_5 : f32 to vector<16x128xf32>
    %8 = arith.maximumf %6, %7 : vector<16x128xf32>
    %c0_6 = arith.constant 0 : index
    %c0_7 = arith.constant 0 : index
    %9 = vector.load %arg4[%c0_6, %c0_7] : memref<128x128xbf16, #tpu.memory_space<vmem>>, vector<128x128xbf16>
    %c0_8 = arith.constant 0 : index
    %c0_9 = arith.constant 0 : index
    %10 = vector.load %arg5[%c0_8, %c0_9] : memref<1x128xf32, #tpu.memory_space<vmem>>, vector<1x128xf32>
    %11 = arith.truncf %8 : vector<16x128xf32> to vector<16x128xbf16>
    %cst_10 = arith.constant dense<0.000000e+00> : vector<16x128xf32>
    %12 = tpu.matmul %11, %9, %cst_10 {dimension_numbers = #tpu.dot_dimension_numbers<[1], [0], [0], [1], [0, 0, 1, 1], [], []>} : vector<16x128xbf16>, vector<128x128xbf16>, vector<16x128xf32> -> vector<16x128xf32>
    %13 = vector.broadcast %10 : vector<1x128xf32> to vector<16x128xf32>
    %14 = arith.addf %12, %13 : vector<16x128xf32>
    %cst_11 = arith.constant 0.000000e+00 : f32
    %15 = vector.broadcast %cst_11 : f32 to vector<16x128xf32>
    %16 = arith.maximumf %14, %15 : vector<16x128xf32>
    %c0_12 = arith.constant 0 : index
    %c0_13 = arith.constant 0 : index
    %17 = vector.load %arg6[%c0_12, %c0_13] : memref<128x128xbf16, #tpu.memory_space<vmem>>, vector<128x128xbf16>
    %c0_14 = arith.constant 0 : index
    %c0_15 = arith.constant 0 : index
    %18 = vector.load %arg7[%c0_14, %c0_15] : memref<1x128xf32, #tpu.memory_space<vmem>>, vector<1x128xf32>
    %19 = arith.truncf %16 : vector<16x128xf32> to vector<16x128xbf16>
    %cst_16 = arith.constant dense<0.000000e+00> : vector<16x128xf32>
    %20 = tpu.matmul %19, %17, %cst_16 {dimension_numbers = #tpu.dot_dimension_numbers<[1], [0], [0], [1], [0, 0, 1, 1], [], []>} : vector<16x128xbf16>, vector<128x128xbf16>, vector<16x128xf32> -> vector<16x128xf32>
    %21 = vector.broadcast %18 : vector<1x128xf32> to vector<16x128xf32>
    %22 = arith.addf %20, %21 : vector<16x128xf32>
    %cst_17 = arith.constant 0.000000e+00 : f32
    %23 = vector.broadcast %cst_17 : f32 to vector<16x128xf32>
    %24 = arith.maximumf %22, %23 : vector<16x128xf32>
    %c0_18 = arith.constant 0 : index
    %c0_19 = arith.constant 0 : index
    %25 = vector.load %arg8[%c0_18, %c0_19] : memref<128x128xbf16, #tpu.memory_space<vmem>>, vector<128x128xbf16>
    %c0_20 = arith.constant 0 : index
    %c0_21 = arith.constant 0 : index
    %26 = vector.load %arg9[%c0_20, %c0_21] : memref<1x128xf32, #tpu.memory_space<vmem>>, vector<1x128xf32>
    %27 = arith.truncf %24 : vector<16x128xf32> to vector<16x128xbf16>
    %cst_22 = arith.constant dense<0.000000e+00> : vector<16x128xf32>
    %28 = tpu.matmul %27, %25, %cst_22 {dimension_numbers = #tpu.dot_dimension_numbers<[1], [0], [0], [1], [0, 0, 1, 1], [], []>} : vector<16x128xbf16>, vector<128x128xbf16>, vector<16x128xf32> -> vector<16x128xf32>
    %29 = vector.broadcast %26 : vector<1x128xf32> to vector<16x128xf32>
    %30 = arith.addf %28, %29 : vector<16x128xf32>
    %31 = arith.truncf %30 : vector<16x128xf32> to vector<16x128xbf16>
    %c0_23 = arith.constant 0 : index
    %c0_24 = arith.constant 0 : index
    %32 = vector.load %arg10[%c0_23, %c0_24] : memref<16x128xbf16, #tpu.memory_space<vmem>>, vector<16x128xbf16>
    tpu.vector_store %arg10[%c0_23, %c0_24], %31 {strides = array<i32>} : memref<16x128xbf16, #tpu.memory_space<vmem>>, vector<16x128xbf16>,
    return
  }
  func.func @transform_0(%arg0: i32) -> (i32, i32) {
    %c0_i32 = arith.constant 0 : i32
    %c0_i32_0 = arith.constant 0 : i32
    return %arg0, %c0_i32 : i32, i32
  }
  func.func @transform_1(%arg0: i32) -> (i32, i32) {
    %c0_i32 = arith.constant 0 : i32
    %c0_i32_0 = arith.constant 0 : i32
    %c0_i32_1 = arith.constant 0 : i32
    return %c0_i32, %c0_i32_0 : i32, i32
  }
  func.func @transform_2(%arg0: i32) -> (i32, i32) {
    %c0_i32 = arith.constant 0 : i32
    %c0_i32_0 = arith.constant 0 : i32
    %c0_i32_1 = arith.constant 0 : i32
    return %c0_i32, %c0_i32_0 : i32, i32
  }
  func.func @transform_3(%arg0: i32) -> (i32, i32) {
    %c0_i32 = arith.constant 0 : i32
    %c0_i32_0 = arith.constant 0 : i32
    %c0_i32_1 = arith.constant 0 : i32
    return %c0_i32, %c0_i32_0 : i32, i32
  }
  func.func @transform_4(%arg0: i32) -> (i32, i32) {
    %c0_i32 = arith.constant 0 : i32
    %c0_i32_0 = arith.constant 0 : i32
    %c0_i32_1 = arith.constant 0 : i32
    return %c0_i32, %c0_i32_0 : i32, i32
  }
  func.func @transform_5(%arg0: i32) -> (i32, i32) {
    %c0_i32 = arith.constant 0 : i32
    %c0_i32_0 = arith.constant 0 : i32
    %c0_i32_1 = arith.constant 0 : i32
    return %c0_i32, %c0_i32_0 : i32, i32
  }
  func.func @transform_6(%arg0: i32) -> (i32, i32) {
    %c0_i32 = arith.constant 0 : i32
    %c0_i32_0 = arith.constant 0 : i32
    %c0_i32_1 = arith.constant 0 : i32
    return %c0_i32, %c0_i32_0 : i32, i32
  }
  func.func @transform_7(%arg0: i32) -> (i32, i32) {
    %c0_i32 = arith.constant 0 : i32
    %c0_i32_0 = arith.constant 0 : i32
    %c0_i32_1 = arith.constant 0 : i32
    return %c0_i32, %c0_i32_0 : i32, i32
  }
  func.func @transform_8(%arg0: i32) -> (i32, i32) {
    %c0_i32 = arith.constant 0 : i32
    %c0_i32_0 = arith.constant 0 : i32
    %c0_i32_1 = arith.constant 0 : i32
    return %c0_i32, %c0_i32_0 : i32, i32
  }
  func.func @transform_9(%arg0: i32) -> (i32, i32) {
    %c0_i32 = arith.constant 0 : i32
    %c0_i32_0 = arith.constant 0 : i32
    return %arg0, %c0_i32 : i32, i32
  }
}

</mosaic_0001>

<bundles_post_ra>
// kernel: tpu_custom_call.1
= control target key start
LH: loop header
LB: loop body
LE: loop exit
PB: predicated region body
PF: predicated region fallthrough
CT: control target
= control target key end

     0   :  { %14 = vsyncpa [#allocation3], 0  ;;  %s827_s0 = inlined_call_operand.hbm [shape: f32[16,16], index: 0, kind: input, shape index: {}]   ;;  %s828_s1 = inlined_call_operand.hbm [shape: bf16[16,128], index: 1, kind: input, shape index: {}]   ;;  %s829_s2 = inlined_call_operand.vmem [shape: f32[1,128], index: 2, kind: input, shape index: {}]   ;;  %s830_s3 = inlined_call_operand.hbm [shape: bf16[128,128], index: 3, kind: input, shape index: {}]   ;;  %s831_s4 = inlined_call_operand.vmem [shape: f32[1,128], index: 4, kind: input, shape index: {}]   ;;  %s832_s5 = inlined_call_operand.hbm [shape: bf16[128,128], index: 5, kind: input, shape index: {}]   ;;  %s833_s6 = inlined_call_operand.vmem [shape: f32[1,128], index: 6, kind: input, shape index: {}]   ;;  %s834_s7 = inlined_call_operand.hbm [shape: bf16[128,128], index: 7, kind: input, shape index: {}]   ;;  %s835_s8 = inlined_call_operand.vmem [shape: f32[1,128], index: 8, kind: input, shape index: {}]   ;;  %s836_s9 = inlined_call_operand.hbm [shape: bf16[16,128], index: 9, kind: output, shape index: {}]  }
   0x1   :  { %15 = vsyncpa [#allocation6], 0 }
   0x2   :  { %16 = vsyncpa [#allocation9], 0  ;;  %s35_s11 = sshll.u32 %s828_s1, 4  ;;  %s36_s11 = int_to_ptr.hbm [resolvable:$true] %s35_s11 }
   0x3   :  { %17 = vsyncpa [#allocation4], 0  ;;  %s722_s12 = smov [#allocation5]   ;;  %s65_s16 = sshll.u32 %s832_s5, 4  ;;  %s66_s16 = int_to_ptr.hbm [resolvable:$true] %s65_s16 }
   0x4   :  { %s37_s13 = sshll.u32 %s722_s12, 4  ;;  %s723_s17 = smov 64   ;;  %s38_s13 = int_to_ptr.vmem [resolvable:$true] %s37_s13 }
   0x5   :  { %s724_s18 = smov 4   ;;  %s725_s19 = smov [#allocation8]  }
   0x6   :  { %43 = dma.hbm_to_vmem [thread:$0]  %s36_s11, 128, %s38_s13, [#allocation6], %s723_s17, %s723_s17, %s724_s18  }
   0x7   :  { %s67_s20 = sshll.u32 %s725_s19, 4  ;;  %s22_s22 = sshll.u32 %s827_s0, 4  ;;  %s68_s20 = int_to_ptr.vmem [resolvable:$true] %s67_s20  ;;  %s23_s22 = int_to_ptr.hbm [resolvable:$true] %s22_s22 }
   0x8   :  { %73 = dma.hbm_to_vmem [thread:$0]  %s66_s16, 1024, %s68_s20, [#allocation9], %s723_s17, %s723_s17, %s724_s18  }
   0x9   :  { %s726_s5 = smov [#allocation2]   ;;  %s50_s26 = sshll.u32 %s830_s3, 4  ;;  %s51_s26 = int_to_ptr.hbm [resolvable:$true] %s50_s26 }
   0xa   :  { %s24_s23 = sshll.u32 %s726_s5, 4  ;;  %s727_s27 = smov 128   ;;  %s25_s23 = int_to_ptr.vmem [resolvable:$true] %s24_s23 }
   0xb   :  { %s728_s28 = smov 8   ;;  %s729_s29 = smov [#allocation7]  }
   0xc   :  { %30 = dma.hbm_to_vmem [thread:$0]  %s23_s22, 256, %s25_s23, [#allocation3], %s727_s27, %s727_s27, %s728_s28  }
   0xd   :  { %s52_s30 = sshll.u32 %s729_s29, 4  ;;  %s80_s11 = sshll.u32 %s834_s7, 4  ;;  %s53_s30 = int_to_ptr.vmem [resolvable:$true] %s52_s30  ;;  %s81_s11 = int_to_ptr.hbm [resolvable:$true] %s80_s11 }
   0xe   :  { %58 = dma.hbm_to_vmem [thread:$0]  %s51_s26, 1024, %s53_s30, [#allocation6], %s723_s17, %s723_s17, %s724_s18  }
   0xf   :  { %s730_s12 = smov [#allocation10]  }
  0x10   :  { %s82_s13 = sshll.u32 %s730_s12, 4  ;;  %s83_s13 = int_to_ptr.vmem [resolvable:$true] %s82_s13 }
  0x11   :  { %88 = dma.hbm_to_vmem [thread:$0]  %s81_s11, 1024, %s83_s13, [#allocation9], %s723_s17, %s723_s17, %s724_s18  }
  0x12   :  { %714 = dma.done.wait [#allocation3], 256  }
  0x13   :  { %715 = vsyncadd [#allocation3], 4294967040 }
  0x14   :  { %716 = dma.done.wait [#allocation6], 1152  }
  0x15   :  { %717 = vsyncadd [#allocation6], 4294966144 }
  0x16   :  { %718 = dma.done.wait [#allocation9], 2048  }
  0x17   :  { %719 = vsyncadd [#allocation9], 4294965248  ;;  %v526_v0 = vld [vmem:[#allocation5] sm:$0xff]  ;;  %v112_v1 = vld [vmem:[#allocation2] sm:$0xff]  ;;  %vm127_vm0 = vcmask 130048   ;;  %s731_s20 = smov [#allocation11]  }
  0x18   :  { %v113_v2 = vld [vmem:[#allocation2 + $0x8] sm:$0xff]  ;;  %v534_v4 = vld [vmem:[#allocation7 + $0x38] sm:$0xff]  ;;  %138 = vmatpush.bf16.msra.mxu0 %v526_v0  ;;  %v532_v6 = vld [vmem:[#allocation7 + $0x28] sm:$0xff]  ;;  %s408_s21 = sshll.u32 %s731_s20, 4  ;;  %s410_s5 = sshll.u32 %s836_s9, 4  ;;  %s409_s21 = int_to_ptr.vmem [resolvable:$true] %s408_s21  ;;  %s411_s5 = int_to_ptr.hbm [resolvable:$true] %s410_s5 }
  0x19   :  { %v117_v3 = vpack.c.bf16 %v113_v2, %v112_v1  ;;  %v533_v5 = vld [vmem:[#allocation7 + $0x30] sm:$0xff]  ;;  %216 = vmatpush.bf16.msra.mxu1 %v534_v4  ;;  %v531_v7 = vld [vmem:[#allocation7 + $0x20] sm:$0xff]  ;;  %v530_v8 = vld [vmem:[#allocation7 + $0x18] sm:$0xff] }
  0x1a   :  { %v529_v9 = vld [vmem:[#allocation7 + $0x10] sm:$0xff]  ;;  %v528_v10 = vld [vmem:[#allocation7 + $0x8] sm:$0xff]  ;;  %v527_v11 = vld [vmem:[#allocation7] sm:$0xff] }
  0x1b   :  { %429 = vmatmul.msk.bf16.vlgmr.msra.gmra.mxu0 %vm127_vm0, %v117_v3  ;;  %v542_v12 = vld [vmem:[#allocation8 + $0x38] sm:$0xff]  ;;  %v541_v13 = vld [vmem:[#allocation8 + $0x30] sm:$0xff]  ;;  %v540_v14 = vld [vmem:[#allocation8 + $0x28] sm:$0xff] }
  0x1c   :  { %301 = vmatpush.bf16.msra.mxu2 %v542_v12  ;;  %v539_v15 = vld [vmem:[#allocation8 + $0x20] sm:$0xff]  ;;  %v566_v17 = vld [vmem:[%s829_s2] ss:$0 sm:$0xff]  ;;  %v538_v24 = vld [vmem:[#allocation8 + $0x18] sm:$0xff] }
  0x1d   :  { %217 = vmatpush.bf16.msra.mxu1 %v533_v5  ;;  %v537_v25 = vld [vmem:[#allocation8 + $0x10] sm:$0xff]  ;;  %v536_v26 = vld [vmem:[#allocation8 + $0x8] sm:$0xff]  ;;  %v535_v27 = vld [vmem:[#allocation8] sm:$0xff] }
  0x1e   :  { %v550_v28 = vld [vmem:[#allocation10 + $0x38] sm:$0xff]  ;;  %v549_v29 = vld [vmem:[#allocation10 + $0x30] sm:$0xff]  ;;  %v548_v30 = vld [vmem:[#allocation10 + $0x28] sm:$0xff] }
  0x1f   :  { %386 = vmatpush.bf16.msra.mxu3 %v550_v28  ;;  %v547_v31 = vld [vmem:[#allocation10 + $0x20] sm:$0xff]  ;;  %v567_v33 = vld [vmem:[%s831_s4] ss:$0 sm:$0xff]  ;;  %v546_v40 = vld [vmem:[#allocation10 + $0x18] sm:$0xff] }
  0x20   :  { %302 = vmatpush.bf16.msra.mxu2 %v541_v13  ;;  %v545_v41 = vld [vmem:[#allocation10 + $0x10] sm:$0xff]  ;;  %v544_v42 = vld [vmem:[#allocation10 + $0x8] sm:$0xff]  ;;  %v543_v43 = vld [vmem:[#allocation10] sm:$0xff] }
  0x21   :  { %218 = vmatpush.bf16.msra.mxu1 %v532_v6  ;;  %v568_v45 = vld [vmem:[%s833_s6] ss:$0 sm:$0xff] }
  0x22   :  { %v569_v53 = vld [vmem:[%s835_s8] ss:$0 sm:$0xff] }
  0x23   :  { %387 = vmatpush.bf16.msra.mxu3 %v549_v29 }
  0x24   :  { %303 = vmatpush.bf16.msra.mxu2 %v540_v14 }
  0x25   :  { %219 = vmatpush.bf16.msra.mxu1 %v531_v7 }
  0x27   :  { %388 = vmatpush.bf16.msra.mxu3 %v548_v30 }
  0x28   :  { %304 = vmatpush.bf16.msra.mxu2 %v539_v15 }
  0x29   :  { %220 = vmatpush.bf16.msra.mxu1 %v530_v8 }
  0x2b   :  { %389 = vmatpush.bf16.msra.mxu3 %v547_v31 }
  0x2c   :  { %305 = vmatpush.bf16.msra.mxu2 %v538_v24 }
  0x2d   :  { %221 = vmatpush.bf16.msra.mxu1 %v529_v9 }
  0x2f   :  { %390 = vmatpush.bf16.msra.mxu3 %v546_v40 }
  0x30   :  { %306 = vmatpush.bf16.msra.mxu2 %v537_v25 }
  0x31   :  { %222 = vmatpush.bf16.msra.mxu1 %v528_v10 }
  0x33   :  { %391 = vmatpush.bf16.msra.mxu3 %v545_v41 }
  0x34   :  { %307 = vmatpush.bf16.msra.mxu2 %v536_v26 }
  0x35   :  { %223 = vmatpush.bf16.msra.mxu1 %v527_v11 }
  0x37   :  { %392 = vmatpush.bf16.msra.mxu3 %v544_v42 }
  0x38   :  { %308 = vmatpush.bf16.msra.mxu2 %v535_v27 }
  0x3b   :  { %393 = vmatpush.bf16.msra.mxu3 %v543_v43 }
  0x98   :  { %v140_v16 = vpop.f32.mrf.mxu0 }
  0x99   :  { %v141_v18 = vadd.f32 %v566_v17, %v140_v16 }
  0x9b   :  { %v145_v21 = vmax.f32 %v141_v18, 0.0 }
  0xa0   :  { %v142_v19 = vpop.f32.mrf.mxu0 }
  0xa1   :  { %v143_v20 = vadd.f32 %v566_v17, %v142_v19 }
  0xa3   :  { %v146_v22 = vmax.f32 %v143_v20, 0.0 }
  0xa5   :  { %v164_v23 = vpack.c.bf16 %v146_v22, %v145_v21 }
  0xa7   :  { %224 = vmatmul.bf16.vlgmr.msra.gmra.mxu1 %v164_v23 }
 0x124   :  { %v225_v32 = vpop.f32.mrf.mxu1 }
 0x125   :  { %v226_v34 = vadd.f32 %v567_v33, %v225_v32 }
 0x127   :  { %v230_v37 = vmax.f32 %v226_v34, 0.0 }
 0x12c   :  { %v227_v35 = vpop.f32.mrf.mxu1 }
 0x12d   :  { %v228_v36 = vadd.f32 %v567_v33, %v227_v35 }
 0x12f   :  { %v231_v38 = vmax.f32 %v228_v36, 0.0 }
 0x131   :  { %v249_v39 = vpack.c.bf16 %v231_v38, %v230_v37 }
 0x133   :  { %309 = vmatmul.bf16.vlgmr.msra.gmra.mxu2 %v249_v39 }
 0x1b6   :  { %v310_v44 = vpop.f32.mrf.mxu2 }
 0x1b7   :  { %v311_v46 = vadd.f32 %v568_v45, %v310_v44 }
 0x1b9   :  { %v315_v49 = vmax.f32 %v311_v46, 0.0 }
 0x1be   :  { %v312_v47 = vpop.f32.mrf.mxu2 }
 0x1bf   :  { %v313_v48 = vadd.f32 %v568_v45, %v312_v47 }
 0x1c1   :  { %v316_v50 = vmax.f32 %v313_v48, 0.0 }
 0x1c3   :  { %v334_v51 = vpack.c.bf16 %v316_v50, %v315_v49 }
 0x1c5   :  { %394 = vmatmul.bf16.vlgmr.msra.gmra.mxu3 %v334_v51 }
 0x248   :  { %v395_v52 = vpop.f32.mrf.mxu3 }
 0x249   :  { %v396_v55 = vadd.f32 %v569_v53, %v395_v52 }
 0x250   :  { %v397_v54 = vpop.f32.mrf.mxu3 }
 0x251   :  { %v398_v56 = vadd.f32 %v569_v53, %v397_v54 }
 0x253   :  { %v554_v57 = vpack.c.bf16 %v398_v56, %v396_v55 }
 0x255   :  { %555 = vst [vmem:[#allocation11] sm:$0xff] %v554_v57  }
 0x256   :  { %416 = dma.vmem_to_hbm [thread:$0]  %s409_s21, 128, %s411_s5, [#allocation4], %s723_s17, %s723_s17, %s724_s18  }
 0x257   :  { %720 = dma.done.wait [#allocation4], 128  }
 0x258   :  { %721 = vsyncadd [#allocation4], 4294967168 }
 0x259   :  { %421 = vsyncpa [#allocation3], 1 }
 0x25a   :  { %422 = vsyncpa [#allocation6], 1 }
 0x25b   :  { %423 = vsyncpa [#allocation9], 1 }
 0x25c   :  { %424 = vsyncpa [#allocation4], 1 }

// kernel: tpu_custom_call.1
= control target key start
LH: loop header
LB: loop body
LE: loop exit
PB: predicated region body
PF: predicated region fallthrough
CT: control target
= control target key end

     0   :  { %14 = vsyncpa [#allocation3], 0  ;;  %s827_s0 = inlined_call_operand.hbm [shape: f32[16,16], index: 0, kind: input, shape index: {}]   ;;  %s828_s1 = inlined_call_operand.hbm [shape: bf16[16,128], index: 1, kind: input, shape index: {}]   ;;  %s829_s2 = inlined_call_operand.vmem [shape: f32[1,128], index: 2, kind: input, shape index: {}]   ;;  %s830_s3 = inlined_call_operand.hbm [shape: bf16[128,128], index: 3, kind: input, shape index: {}]   ;;  %s831_s4 = inlined_call_operand.vmem [shape: f32[1,128], index: 4, kind: input, shape index: {}]   ;;  %s832_s5 = inlined_call_operand.hbm [shape: bf16[128,128], index: 5, kind: input, shape index: {}]   ;;  %s833_s6 = inlined_call_operand.vmem [shape: f32[1,128], index: 6, kind: input, shape index: {}]   ;;  %s834_s7 = inlined_call_operand.hbm [shape: bf16[128,128], index: 7, kind: input, shape index: {}]   ;;  %s835_s8 = inlined_call_operand.vmem [shape: f32[1,128], index: 8, kind: input, shape index: {}]   ;;  %s836_s9 = inlined_call_operand.hbm [shape: bf16[16,128], index: 9, kind: output, shape index: {}]  }
   0x1   :  { %15 = vsyncpa [#allocation6], 0 }
   0x2   :  { %16 = vsyncpa [#allocation9], 0  ;;  %s35_s11 = sshll.u32 %s828_s1, 4  ;;  %s36_s11 = int_to_ptr.hbm [resolvable:$true] %s35_s11 }
   0x3   :  { %17 = vsyncpa [#allocation4], 0  ;;  %s722_s12 = smov [#allocation5]   ;;  %s65_s16 = sshll.u32 %s832_s5, 4  ;;  %s66_s16 = int_to_ptr.hbm [resolvable:$true] %s65_s16 }
   0x4   :  { %s37_s13 = sshll.u32 %s722_s12, 4  ;;  %s723_s17 = smov 64   ;;  %s38_s13 = int_to_ptr.vmem [resolvable:$true] %s37_s13 }
   0x5   :  { %s724_s18 = smov 4   ;;  %s725_s19 = smov [#allocation8]  }
   0x6   :  { %43 = dma.hbm_to_vmem [thread:$0]  %s36_s11, 128, %s38_s13, [#allocation6], %s723_s17, %s723_s17, %s724_s18  }
   0x7   :  { %s67_s20 = sshll.u32 %s725_s19, 4  ;;  %s22_s22 = sshll.u32 %s827_s0, 4  ;;  %s68_s20 = int_to_ptr.vmem [resolvable:$true] %s67_s20  ;;  %s23_s22 = int_to_ptr.hbm [resolvable:$true] %s22_s22 }
   0x8   :  { %73 = dma.hbm_to_vmem [thread:$0]  %s66_s16, 1024, %s68_s20, [#allocation9], %s723_s17, %s723_s17, %s724_s18  }
   0x9   :  { %s726_s5 = smov [#allocation2]   ;;  %s50_s26 = sshll.u32 %s830_s3, 4  ;;  %s51_s26 = int_to_ptr.hbm [resolvable:$true] %s50_s26 }
   0xa   :  { %s24_s23 = sshll.u32 %s726_s5, 4  ;;  %s727_s27 = smov 128   ;;  %s25_s23 = int_to_ptr.vmem [resolvable:$true] %s24_s23 }
   0xb   :  { %s728_s28 = smov 8   ;;  %s729_s29 = smov [#allocation7]  }
   0xc   :  { %30 = dma.hbm_to_vmem [thread:$0]  %s23_s22, 256, %s25_s23, [#allocation3], %s727_s27, %s727_s27, %s728_s28  }
   0xd   :  { %s52_s30 = sshll.u32 %s729_s29, 4  ;;  %s80_s11 = sshll.u32 %s834_s7, 4  ;;  %s53_s30 = int_to_ptr.vmem [resolvable:$true] %s52_s30  ;;  %s81_s11 = int_to_ptr.hbm [resolvable:$true] %s80_s11 }
   0xe   :  { %58 = dma.hbm_to_vmem [thread:$0]  %s51_s26, 1024, %s53_s30, [#allocation6], %s723_s17, %s723_s17, %s724_s18  }
   0xf   :  { %s730_s12 = smov [#allocation10]  }
  0x10   :  { %s82_s13 = sshll.u32 %s730_s12, 4  ;;  %s83_s13 = int_to_ptr.vmem [resolvable:$true] %s82_s13 }
  0x11   :  { %88 = dma.hbm_to_vmem [thread:$0]  %s81_s11, 1024, %s83_s13, [#allocation9], %s723_s17, %s723_s17, %s724_s18  }
  0x12   :  { %714 = dma.done.wait [#allocation3], 256  }
  0x13   :  { %715 = vsyncadd [#allocation3], 4294967040 }
  0x14   :  { %716 = dma.done.wait [#allocation6], 1152  }
  0x15   :  { %717 = vsyncadd [#allocation6], 4294966144 }
  0x16   :  { %718 = dma.done.wait [#allocation9], 2048  }
  0x17   :  { %719 = vsyncadd [#allocation9], 4294965248  ;;  %v526_v0 = vld [vmem:[#allocation5] sm:$0xff]  ;;  %v112_v1 = vld [vmem:[#allocation2] sm:$0xff]  ;;  %vm127_vm0 = vcmask 130048   ;;  %s731_s20 = smov [#allocation11]  }
  0x18   :  { %v113_v2 = vld [vmem:[#allocation2 + $0x8] sm:$0xff]  ;;  %v534_v4 = vld [vmem:[#allocation7 + $0x38] sm:$0xff]  ;;  %138 = vmatpush.bf16.msra.mxu0 %v526_v0  ;;  %v532_v6 = vld [vmem:[#allocation7 + $0x28] sm:$0xff]  ;;  %s408_s21 = sshll.u32 %s731_s20, 4  ;;  %s410_s5 = sshll.u32 %s836_s9, 4  ;;  %s409_s21 = int_to_ptr.vmem [resolvable:$true] %s408_s21  ;;  %s411_s5 = int_to_ptr.hbm [resolvable:$true] %s410_s5 }
  0x19   :  { %v117_v3 = vpack.c.bf16 %v113_v2, %v112_v1  ;;  %v533_v5 = vld [vmem:[#allocation7 + $0x30] sm:$0xff]  ;;  %216 = vmatpush.bf16.msra.mxu1 %v534_v4  ;;  %v531_v7 = vld [vmem:[#allocation7 + $0x20] sm:$0xff]  ;;  %v530_v8 = vld [vmem:[#allocation7 + $0x18] sm:$0xff] }
  0x1a   :  { %v529_v9 = vld [vmem:[#allocation7 + $0x10] sm:$0xff]  ;;  %v528_v10 = vld [vmem:[#allocation7 + $0x8] sm:$0xff]  ;;  %v527_v11 = vld [vmem:[#allocation7] sm:$0xff] }
  0x1b   :  { %429 = vmatmul.msk.bf16.vlgmr.msra.gmra.mxu0 %vm127_vm0, %v117_v3  ;;  %v542_v12 = vld [vmem:[#allocation8 + $0x38] sm:$0xff]  ;;  %v541_v13 = vld [vmem:[#allocation8 + $0x30] sm:$0xff]  ;;  %v540_v14 = vld [vmem:[#allocation8 + $0x28] sm:$0xff] }
  0x1c   :  { %301 = vmatpush.bf16.msra.mxu2 %v542_v12  ;;  %v539_v15 = vld [vmem:[#allocation8 + $0x20] sm:$0xff]  ;;  %v566_v17 = vld [vmem:[%s829_s2] ss:$0 sm:$0xff]  ;;  %v538_v24 = vld [vmem:[#allocation8 + $0x18] sm:$0xff] }
  0x1d   :  { %217 = vmatpush.bf16.msra.mxu1 %v533_v5  ;;  %v537_v25 = vld [vmem:[#allocation8 + $0x10] sm:$0xff]  ;;  %v536_v26 = vld [vmem:[#allocation8 + $0x8] sm:$0xff]  ;;  %v535_v27 = vld [vmem:[#allocation8] sm:$0xff] }
  0x1e   :  { %v550_v28 = vld [vmem:[#allocation10 + $0x38] sm:$0xff]  ;;  %v549_v29 = vld [vmem:[#allocation10 + $0x30] sm:$0xff]  ;;  %v548_v30 = vld [vmem:[#allocation10 + $0x28] sm:$0xff] }
  0x1f   :  { %386 = vmatpush.bf16.msra.mxu3 %v550_v28  ;;  %v547_v31 = vld [vmem:[#allocation10 + $0x20] sm:$0xff]  ;;  %v567_v33 = vld [vmem:[%s831_s4] ss:$0 sm:$0xff]  ;;  %v546_v40 = vld [vmem:[#allocation10 + $0x18] sm:$0xff] }
  0x20   :  { %302 = vmatpush.bf16.msra.mxu2 %v541_v13  ;;  %v545_v41 = vld [vmem:[#allocation10 + $0x10] sm:$0xff]  ;;  %v544_v42 = vld [vmem:[#allocation10 + $0x8] sm:$0xff]  ;;  %v543_v43 = vld [vmem:[#allocation10] sm:$0xff] }
  0x21   :  { %218 = vmatpush.bf16.msra.mxu1 %v532_v6  ;;  %v568_v45 = vld [vmem:[%s833_s6] ss:$0 sm:$0xff] }
  0x22   :  { %v569_v53 = vld [vmem:[%s835_s8] ss:$0 sm:$0xff] }
  0x23   :  { %387 = vmatpush.bf16.msra.mxu3 %v549_v29 }
  0x24   :  { %303 = vmatpush.bf16.msra.mxu2 %v540_v14 }
  0x25   :  { %219 = vmatpush.bf16.msra.mxu1 %v531_v7 }
  0x27   :  { %388 = vmatpush.bf16.msra.mxu3 %v548_v30 }
  0x28   :  { %304 = vmatpush.bf16.msra.mxu2 %v539_v15 }
  0x29   :  { %220 = vmatpush.bf16.msra.mxu1 %v530_v8 }
  0x2b   :  { %389 = vmatpush.bf16.msra.mxu3 %v547_v31 }
  0x2c   :  { %305 = vmatpush.bf16.msra.mxu2 %v538_v24 }
  0x2d   :  { %221 = vmatpush.bf16.msra.mxu1 %v529_v9 }
  0x2f   :  { %390 = vmatpush.bf16.msra.mxu3 %v546_v40 }
  0x30   :  { %306 = vmatpush.bf16.msra.mxu2 %v537_v25 }
  0x31   :  { %222 = vmatpush.bf16.msra.mxu1 %v528_v10 }
  0x33   :  { %391 = vmatpush.bf16.msra.mxu3 %v545_v41 }
  0x34   :  { %307 = vmatpush.bf16.msra.mxu2 %v536_v26 }
  0x35   :  { %223 = vmatpush.bf16.msra.mxu1 %v527_v11 }
  0x37   :  { %392 = vmatpush.bf16.msra.mxu3 %v544_v42 }
  0x38   :  { %308 = vmatpush.bf16.msra.mxu2 %v535_v27 }
  0x3b   :  { %393 = vmatpush.bf16.msra.mxu3 %v543_v43 }
  0x98   :  { %v140_v16 = vpop.f32.mrf.mxu0 }
  0x99   :  { %v141_v18 = vadd.f32 %v566_v17, %v140_v16 }
  0x9b   :  { %v145_v21 = vmax.f32 %v141_v18, 0.0 }
  0xa0   :  { %v142_v19 = vpop.f32.mrf.mxu0 }
  0xa1   :  { %v143_v20 = vadd.f32 %v566_v17, %v142_v19 }
  0xa3   :  { %v146_v22 = vmax.f32 %v143_v20, 0.0 }
  0xa5   :  { %v164_v23 = vpack.c.bf16 %v146_v22, %v145_v21 }
  0xa7   :  { %224 = vmatmul.bf16.vlgmr.msra.gmra.mxu1 %v164_v23 }
 0x124   :  { %v225_v32 = vpop.f32.mrf.mxu1 }
 0x125   :  { %v226_v34 = vadd.f32 %v567_v33, %v225_v32 }
 0x127   :  { %v230_v37 = vmax.f32 %v226_v34, 0.0 }
 0x12c   :  { %v227_v35 = vpop.f32.mrf.mxu1 }
 0x12d   :  { %v228_v36 = vadd.f32 %v567_v33, %v227_v35 }
 0x12f   :  { %v231_v38 = vmax.f32 %v228_v36, 0.0 }
 0x131   :  { %v249_v39 = vpack.c.bf16 %v231_v38, %v230_v37 }
 0x133   :  { %309 = vmatmul.bf16.vlgmr.msra.gmra.mxu2 %v249_v39 }
 0x1b6   :  { %v310_v44 = vpop.f32.mrf.mxu2 }
 0x1b7   :  { %v311_v46 = vadd.f32 %v568_v45, %v310_v44 }
 0x1b9   :  { %v315_v49 = vmax.f32 %v311_v46, 0.0 }
 0x1be   :  { %v312_v47 = vpop.f32.mrf.mxu2 }
 0x1bf   :  { %v313_v48 = vadd.f32 %v568_v45, %v312_v47 }
 0x1c1   :  { %v316_v50 = vmax.f32 %v313_v48, 0.0 }
 0x1c3   :  { %v334_v51 = vpack.c.bf16 %v316_v50, %v315_v49 }
 0x1c5   :  { %394 = vmatmul.bf16.vlgmr.msra.gmra.mxu3 %v334_v51 }
 0x248   :  { %v395_v52 = vpop.f32.mrf.mxu3 }
 0x249   :  { %v396_v55 = vadd.f32 %v569_v53, %v395_v52 }
 0x250   :  { %v397_v54 = vpop.f32.mrf.mxu3 }
 0x251   :  { %v398_v56 = vadd.f32 %v569_v53, %v397_v54 }
 0x253   :  { %v554_v57 = vpack.c.bf16 %v398_v56, %v396_v55 }
 0x255   :  { %555 = vst [vmem:[#allocation11] sm:$0xff] %v554_v57  }
 0x256   :  { %416 = dma.vmem_to_hbm [thread:$0]  %s409_s21, 128, %s411_s5, [#allocation4], %s723_s17, %s723_s17, %s724_s18  }
 0x257   :  { %720 = dma.done.wait [#allocation4], 128  }
 0x258   :  { %721 = vsyncadd [#allocation4], 4294967168 }
 0x259   :  { %421 = vsyncpa [#allocation3], 1 }
 0x25a   :  { %422 = vsyncpa [#allocation6], 1 }
 0x25b   :  { %423 = vsyncpa [#allocation9], 1 }
 0x25c   :  { %424 = vsyncpa [#allocation4], 1 }

</bundles_post_ra>
